<compile_context>
chip_gen: v5e
topology: v5e:2x2
jax: 0.10.0
libtpu: 0.0.40
codegen_flags: <defaults>
</compile_context>

<pallas_src>
import jax
import jax.numpy as jnp
from jax.experimental import pallas as pl
from jax.experimental.pallas import tpu as pltpu


_H1 = 128       # fc1 out features
_H2 = 64        # fc2 out features
_H2_PAD = 128   # fc2 outputs zero-padded to 128 lanes (lane-dense h2)
_OUT = 2        # fc3 out features (output is NOT padded)


def _mlp_kernel(x_ref, w1_ref, b1_ref, w2_ref, b2_ref, w3_ref, b3_ref, o_ref):
    cd = w1_ref.dtype  # matmul operand dtype (bf16 default; f32 optional)
    x = x_ref[...].astype(cd)          # no-op if x is already in cd
    # fc1 + ReLU  (f32 accumulation, bias/ReLU in f32)
    h1 = jnp.dot(x, w1_ref[...], preferred_element_type=jnp.float32) + b1_ref[...]
    h1 = jnp.maximum(h1, 0.0)
    # fc2 + ReLU  (padded to 128 lanes; padded columns are exactly 0)
    h2 = jnp.dot(h1.astype(cd), w2_ref[...],
                 preferred_element_type=jnp.float32) + b2_ref[...]
    h2 = jnp.maximum(h2, 0.0)
    # fc3 (no activation) — narrow (tm, 2) store; masked vst is cheap here
    out = jnp.dot(h2.astype(cd), w3_ref[...],
                  preferred_element_type=jnp.float32) + b3_ref[...]
    o_ref[...] = out.astype(o_ref.dtype)


def _round_up(a, m):
    return ((a + m - 1) // m) * m


def prepare_params(params, compute_dtype=jnp.bfloat16):
    """Cast / pad weights ONCE (hoisted out of the per-call path).

    bf16 operands are the right default on v5e, v6e and v7x — the MXU runs
    bf16 natively on all three; bias/ReLU stay in f32 regardless.
    """
    w1 = params["w1"].astype(compute_dtype)                       # (d_in, 128)
    b1 = params["b1"].astype(jnp.float32).reshape(1, _H1)         # (1, 128)
    w2 = jnp.pad(params["w2"].astype(compute_dtype),
                 ((0, 0), (0, _H2_PAD - _H2)))                    # (128, 128)
    b2 = jnp.pad(params["b2"].astype(jnp.float32).reshape(1, _H2),
                 ((0, 0), (0, _H2_PAD - _H2)))                    # (1, 128)
    w3 = jnp.pad(params["w3"].astype(compute_dtype),
                 ((0, _H2_PAD - _H2), (0, 0)))                    # (128, 2)
    b3 = params["b3"].astype(jnp.float32).reshape(1, _OUT)        # (1, 2)
    return {"w1": w1, "b1": b1, "w2": w2, "b2": b2, "w3": w3, "b3": b3}


def _choose_tm(B, d_in, d_out, requested_tm, vmem_budget_bytes=24 << 20):
    """Derive the batch tile from a VMEM budget (safe on v7x's 64 MiB)."""
    # Per-row footprint: double-buffered x + out tiles (f32 worst case) plus
    # f32 intermediates (h1, h2 at 128 lanes) and slack.
    bytes_per_row = 4 * (2 * d_in + 2 * d_out + 2 * _H2_PAD + 16)
    tm_cap = max(8, (vmem_budget_bytes // bytes_per_row) // 8 * 8)
    tm = max(8, min(_round_up(requested_tm, 8), tm_cap, _round_up(B, 8)))
    # Keep at least 2 grid steps when the batch allows it (v7x has 2 TCs).
    if B > 16:
        tm = min(tm, _round_up((B + 1) // 2, 8))
    return max(8, tm)


def ann_forward(x, prepared, *, tm=2048):
    """x: (B, input_size), float32 or bfloat16. prepared: prepare_params(...)."""
    B, d_in = x.shape
    w1, b1 = prepared["w1"], prepared["b1"]
    w2, b2 = prepared["w2"], prepared["b2"]
    w3, b3 = prepared["w3"], prepared["b3"]
    d_out = w3.shape[1]  # == 2

    tm_eff = _choose_tm(B, d_in, d_out, tm)
    grid = (pl.cdiv(B, tm_eff),)

    w_item = jnp.dtype(w1.dtype).itemsize
    cost = pl.CostEstimate(
        flops=2 * B * (d_in * _H1 + _H1 * _H2_PAD + _H2_PAD * d_out),
        transcendentals=0,
        bytes_accessed=(B * d_in * jnp.dtype(x.dtype).itemsize      # x read
                        + B * d_out * 4                             # out write
                        + (d_in * _H1 + _H1 * _H2_PAD + _H2_PAD * d_out) * w_item
                        + (_H1 + _H2_PAD + d_out) * 4),             # biases
    )

    return pl.pallas_call(
        _mlp_kernel,
        out_shape=jax.ShapeDtypeStruct((B, d_out), jnp.float32),
        grid_spec=pltpu.PrefetchScalarGridSpec(
            num_scalar_prefetch=0,
            grid=grid,
            in_specs=[
                pl.BlockSpec((tm_eff, d_in), lambda i: (i, 0)),   # x tile
                pl.BlockSpec(w1.shape, lambda i: (0, 0)),         # w1 (resident)
                pl.BlockSpec(b1.shape, lambda i: (0, 0)),         # b1
                pl.BlockSpec(w2.shape, lambda i: (0, 0)),         # w2 (padded)
                pl.BlockSpec(b2.shape, lambda i: (0, 0)),         # b2 (padded)
                pl.BlockSpec(w3.shape, lambda i: (0, 0)),         # w3 (padded K)
                pl.BlockSpec(b3.shape, lambda i: (0, 0)),         # b3
            ],
            out_specs=pl.BlockSpec((tm_eff, d_out), lambda i: (i, 0)),
        ),
        compiler_params=pltpu.CompilerParams(
            dimension_semantics=("parallel",),
        ),
        cost_estimate=cost,
    )(x, w1, b1, w2, b2, w3, b3)


def init_params(key, input_size):
    """Deterministic synthetic parameters matching nn.Linear shapes.

    PyTorch stores weights as (out, in); we store the transpose (in, out)."""
    def linear(k, fan_in, fan_out):
        kw, kb = jax.random.split(k)
        bound = 1.0 / jnp.sqrt(fan_in)
        w = jax.random.uniform(kw, (fan_in, fan_out), jnp.float32, -bound, bound)
        b = jax.random.uniform(kb, (1, fan_out), jnp.float32, -bound, bound)
        return w, b

    k1, k2, k3 = jax.random.split(key, 3)
    w1, b1 = linear(k1, input_size, _H1)
    w2, b2 = linear(k2, _H1, _H2)
    w3, b3 = linear(k3, _H2, _OUT)
    return {"w1": w1, "b1": b1, "w2": w2, "b2": b2, "w3": w3, "b3": b3}


def ann_reference_f32(x, p):
    h1 = jnp.maximum(x @ p["w1"] + p["b1"], 0.0)
    h2 = jnp.maximum(h1 @ p["w2"] + p["b2"], 0.0)
    return h2 @ p["w3"] + p["b3"]


def ann_reference_mixed(x, p, compute_dtype):
    """Mirrors the kernel's bf16-operand / f32-accumulate numerics."""
    cd = compute_dtype
    h1 = jnp.maximum(jnp.dot(x.astype(cd), p["w1"].astype(cd),
                             preferred_element_type=jnp.float32) + p["b1"], 0.0)
    h2 = jnp.maximum(jnp.dot(h1.astype(cd), p["w2"].astype(cd),
                             preferred_element_type=jnp.float32) + p["b2"], 0.0)
    return jnp.dot(h2.astype(cd), p["w3"].astype(cd),
                   preferred_element_type=jnp.float32) + p["b3"]


if __name__ == "__main__":
    key = jax.random.PRNGKey(0)
    kx, kp, kx2 = jax.random.split(key, 3)

    input_size = 32
    raw = init_params(kp, input_size)

    # (1) small batch, default bf16-operand fast path (all generations)
    prepped_bf16 = prepare_params(raw, jnp.bfloat16)
    x_small = jax.random.normal(kx, (8, input_size), jnp.float32)
    out_bf16 = jax.block_until_ready(ann_forward(x_small, prepped_bf16))
    ref_bf16 = ann_reference_mixed(x_small, raw, jnp.bfloat16)
    assert out_bf16.shape == (8, _OUT)
    assert jnp.allclose(out_bf16, ref_bf16, atol=1e-2, rtol=1e-2), "bf16 mismatch"

    # (2) small batch, f32-operand path (tolerance check — MXU f32 is
    #     multi-pass, so not expected to be bitwise identical to XLA)
    prepped_f32 = prepare_params(raw, jnp.float32)
    out_f32 = jax.block_until_ready(ann_forward(x_small, prepped_f32))
    ref_f32 = ann_reference_f32(x_small, raw)
    assert out_f32.shape == (8, _OUT)
    assert jnp.allclose(out_f32, ref_f32, atol=1e-5, rtol=1e-5), "f32 mismatch"

    # (3) batch not divisible by the tile: exercises the partial last block
    #     (no wrapper-side jnp.pad) and a >=2-step parallel grid
    x_big = jax.random.normal(kx2, (1000, input_size), jnp.float32)
    out_big = jax.block_until_ready(ann_forward(x_big, prepped_bf16))
    ref_big = ann_reference_mixed(x_big, raw, jnp.bfloat16)
    assert out_big.shape == (1000, _OUT)
    assert jnp.allclose(out_big, ref_big, atol=1e-2, rtol=1e-2), "big-batch mismatch"

    print("KERNEL_OK")
</pallas_src>

<mosaic_0001>
module attributes {stable_mosaic.version = 11 : i64} {
  func.func @_mlp_kernel(%arg0: i32, %arg1: memref<8x32xf32, #tpu.memory_space<vmem>>, %arg2: memref<32x128xbf16, #tpu.memory_space<vmem>>, %arg3: memref<1x128xf32, #tpu.memory_space<vmem>>, %arg4: memref<128x128xbf16, #tpu.memory_space<vmem>>, %arg5: memref<1x128xf32, #tpu.memory_space<vmem>>, %arg6: memref<128x2xbf16, #tpu.memory_space<vmem>>, %arg7: memref<1x2xf32, #tpu.memory_space<vmem>>, %arg8: memref<8x2xf32, #tpu.memory_space<vmem>>) attributes {dimension_semantics = [#tpu.dimension_semantics<parallel>], iteration_bounds = array<i64: 1>, scalar_prefetch = 0 : i64, scratch_operands = 0 : i64, tpu.core_type = #tpu.core_type<tc>, window_params = [{transform_indices = @transform_0, window_bounds = array<i64: 8, 32>}, {pipeline_mode = #tpu.pipeline_mode<synchronous>, transform_indices = @transform_1, window_bounds = array<i64: 32, 128>}, {pipeline_mode = #tpu.pipeline_mode<synchronous>, transform_indices = @transform_2, window_bounds = array<i64: 1, 128>}, {pipeline_mode = #tpu.pipeline_mode<synchronous>, transform_indices = @transform_3, window_bounds = array<i64: 128, 128>}, {pipeline_mode = #tpu.pipeline_mode<synchronous>, transform_indices = @transform_4, window_bounds = array<i64: 1, 128>}, {pipeline_mode = #tpu.pipeline_mode<synchronous>, transform_indices = @transform_5, window_bounds = array<i64: 128, 2>}, {pipeline_mode = #tpu.pipeline_mode<synchronous>, transform_indices = @transform_6, window_bounds = array<i64: 1, 2>}, {transform_indices = @transform_7, window_bounds = array<i64: 8, 2>}]} {
    %c0 = arith.constant 0 : index
    %c0_0 = arith.constant 0 : index
    %0 = vector.load %arg1[%c0, %c0_0] : memref<8x32xf32, #tpu.memory_space<vmem>>, vector<8x32xf32>
    %1 = arith.truncf %0 : vector<8x32xf32> to vector<8x32xbf16>
    %c0_1 = arith.constant 0 : index
    %c0_2 = arith.constant 0 : index
    %2 = vector.load %arg2[%c0_1, %c0_2] : memref<32x128xbf16, #tpu.memory_space<vmem>>, vector<32x128xbf16>
    %cst = arith.constant dense<0.000000e+00> : vector<8x128xf32>
    %3 = tpu.matmul %1, %2, %cst {dimension_numbers = #tpu.dot_dimension_numbers<[1], [0], [0], [1], [0, 0, 1, 1], [], []>} : vector<8x32xbf16>, vector<32x128xbf16>, vector<8x128xf32> -> vector<8x128xf32>
    %c0_3 = arith.constant 0 : index
    %c0_4 = arith.constant 0 : index
    %4 = vector.load %arg3[%c0_3, %c0_4] : memref<1x128xf32, #tpu.memory_space<vmem>>, vector<1x128xf32>
    %5 = vector.broadcast %4 : vector<1x128xf32> to vector<8x128xf32>
    %6 = arith.addf %3, %5 : vector<8x128xf32>
    %cst_5 = arith.constant 0.000000e+00 : f32
    %7 = vector.broadcast %cst_5 : f32 to vector<8x128xf32>
    %8 = arith.maximumf %6, %7 : vector<8x128xf32>
    %9 = arith.truncf %8 : vector<8x128xf32> to vector<8x128xbf16>
    %c0_6 = arith.constant 0 : index
    %c0_7 = arith.constant 0 : index
    %10 = vector.load %arg4[%c0_6, %c0_7] : memref<128x128xbf16, #tpu.memory_space<vmem>>, vector<128x128xbf16>
    %cst_8 = arith.constant dense<0.000000e+00> : vector<8x128xf32>
    %11 = tpu.matmul %9, %10, %cst_8 {dimension_numbers = #tpu.dot_dimension_numbers<[1], [0], [0], [1], [0, 0, 1, 1], [], []>} : vector<8x128xbf16>, vector<128x128xbf16>, vector<8x128xf32> -> vector<8x128xf32>
    %c0_9 = arith.constant 0 : index
    %c0_10 = arith.constant 0 : index
    %12 = vector.load %arg5[%c0_9, %c0_10] : memref<1x128xf32, #tpu.memory_space<vmem>>, vector<1x128xf32>
    %13 = vector.broadcast %12 : vector<1x128xf32> to vector<8x128xf32>
    %14 = arith.addf %11, %13 : vector<8x128xf32>
    %cst_11 = arith.constant 0.000000e+00 : f32
    %15 = vector.broadcast %cst_11 : f32 to vector<8x128xf32>
    %16 = arith.maximumf %14, %15 : vector<8x128xf32>
    %17 = arith.truncf %16 : vector<8x128xf32> to vector<8x128xbf16>
    %c0_12 = arith.constant 0 : index
    %c0_13 = arith.constant 0 : index
    %18 = vector.load %arg6[%c0_12, %c0_13] : memref<128x2xbf16, #tpu.memory_space<vmem>>, vector<128x2xbf16>
    %cst_14 = arith.constant dense<0.000000e+00> : vector<8x2xf32>
    %19 = tpu.matmul %17, %18, %cst_14 {dimension_numbers = #tpu.dot_dimension_numbers<[1], [0], [0], [1], [0, 0, 1, 1], [], []>} : vector<8x128xbf16>, vector<128x2xbf16>, vector<8x2xf32> -> vector<8x2xf32>
    %c0_15 = arith.constant 0 : index
    %c0_16 = arith.constant 0 : index
    %20 = vector.load %arg7[%c0_15, %c0_16] : memref<1x2xf32, #tpu.memory_space<vmem>>, vector<1x2xf32>
    %21 = vector.broadcast %20 : vector<1x2xf32> to vector<8x2xf32>
    %22 = arith.addf %19, %21 : vector<8x2xf32>
    %c0_17 = arith.constant 0 : index
    %c0_18 = arith.constant 0 : index
    %23 = vector.load %arg8[%c0_17, %c0_18] : memref<8x2xf32, #tpu.memory_space<vmem>>, vector<8x2xf32>
    tpu.vector_store %arg8[%c0_17, %c0_18], %22 {strides = array<i32>} : memref<8x2xf32, #tpu.memory_space<vmem>>, vector<8x2xf32>,
    return
  }
  func.func @transform_0(%arg0: i32) -> (i32, i32) {
    %c0_i32 = arith.constant 0 : i32
    %c0_i32_0 = arith.constant 0 : i32
    return %arg0, %c0_i32 : i32, i32
  }
  func.func @transform_1(%arg0: i32) -> (i32, i32) {
    %c0_i32 = arith.constant 0 : i32
    %c0_i32_0 = arith.constant 0 : i32
    %c0_i32_1 = arith.constant 0 : i32
    return %c0_i32, %c0_i32_0 : i32, i32
  }
  func.func @transform_2(%arg0: i32) -> (i32, i32) {
    %c0_i32 = arith.constant 0 : i32
    %c0_i32_0 = arith.constant 0 : i32
    %c0_i32_1 = arith.constant 0 : i32
    return %c0_i32, %c0_i32_0 : i32, i32
  }
  func.func @transform_3(%arg0: i32) -> (i32, i32) {
    %c0_i32 = arith.constant 0 : i32
    %c0_i32_0 = arith.constant 0 : i32
    %c0_i32_1 = arith.constant 0 : i32
    return %c0_i32, %c0_i32_0 : i32, i32
  }
  func.func @transform_4(%arg0: i32) -> (i32, i32) {
    %c0_i32 = arith.constant 0 : i32
    %c0_i32_0 = arith.constant 0 : i32
    %c0_i32_1 = arith.constant 0 : i32
    return %c0_i32, %c0_i32_0 : i32, i32
  }
  func.func @transform_5(%arg0: i32) -> (i32, i32) {
    %c0_i32 = arith.constant 0 : i32
    %c0_i32_0 = arith.constant 0 : i32
    %c0_i32_1 = arith.constant 0 : i32
    return %c0_i32, %c0_i32_0 : i32, i32
  }
  func.func @transform_6(%arg0: i32) -> (i32, i32) {
    %c0_i32 = arith.constant 0 : i32
    %c0_i32_0 = arith.constant 0 : i32
    %c0_i32_1 = arith.constant 0 : i32
    return %c0_i32, %c0_i32_0 : i32, i32
  }
  func.func @transform_7(%arg0: i32) -> (i32, i32) {
    %c0_i32 = arith.constant 0 : i32
    %c0_i32_0 = arith.constant 0 : i32
    return %arg0, %c0_i32 : i32, i32
  }
}

</mosaic_0001>

<bundles_post_ra>
// kernel: tpu_custom_call.1
= control target key start
LH: loop header
LB: loop body
LE: loop exit
PB: predicated region body
PF: predicated region fallthrough
CT: control target
= control target key end

     0   :  { %12 = vsyncpa [#allocation3], 0  ;;  %s530_s0 = inlined_call_operand.hbm [shape: f32[8,32], index: 0, kind: input, shape index: {}]   ;;  %s531_s1 = inlined_call_operand.hbm [shape: bf16[32,128], index: 1, kind: input, shape index: {}]   ;;  %s532_s2 = inlined_call_operand.vmem [shape: f32[1,128], index: 2, kind: input, shape index: {}]   ;;  %s533_s3 = inlined_call_operand.vmem [shape: bf16[128,128], index: 3, kind: input, shape index: {}]   ;;  %s534_s4 = inlined_call_operand.vmem [shape: f32[1,128], index: 4, kind: input, shape index: {}]   ;;  %s535_s5 = inlined_call_operand.vmem [shape: bf16[128,2], index: 5, kind: input, shape index: {}]   ;;  %s536_s6 = inlined_call_operand.vmem [shape: f32[1,2], index: 6, kind: input, shape index: {}]   ;;  %s537_s7 = inlined_call_operand.vmem [shape: f32[8,2], index: 7, kind: output, shape index: {}]  }
   0x1   :  { %s19_s26 = sshll.u32 %s530_s0, 4  ;;  %s20_s26 = int_to_ptr.hbm [resolvable:$true] %s19_s26 }
   0x2   :  { %13 = vsyncpa [#allocation5], 0  ;;  %s420_s27 = smov [#allocation2]   ;;  %s29_s8 = sshll.u32 %s531_s1, 4  ;;  %s30_s8 = int_to_ptr.hbm [resolvable:$true] %s29_s8 }
   0x3   :  { %s21_s28 = sshll.u32 %s420_s27, 4  ;;  %s421_s9 = smov [#allocation4]   ;;  %s22_s28 = int_to_ptr.vmem [resolvable:$true] %s21_s28 }
   0x4   :  { %24 = dma.hbm_to_vmem [thread:$0]  %s20_s26, 128, %s22_s28, [#allocation3]  }
   0x5   :  { %s31_s10 = sshll.u32 %s421_s9, 4  ;;  %s422_s11 = smov 64   ;;  %s32_s10 = int_to_ptr.vmem [resolvable:$true] %s31_s10 }
   0x6   :  { %s423_s12 = smov 4  }
   0x7   :  { %37 = dma.hbm_to_vmem [thread:$0]  %s30_s8, 256, %s32_s10, [#allocation5], %s422_s11, %s422_s11, %s423_s12  }
   0x8   :  { %416 = dma.done.wait [#allocation3], 128  }
   0x9   :  { %417 = vsyncadd [#allocation3], 4294967168 }
   0xa   :  { %418 = dma.done.wait [#allocation5], 256  }
   0xb   :  { %419 = vsyncadd [#allocation5], 4294967040  ;;  %v344_v0 = vld [vmem:[#allocation4 + $0x8] sm:$0xff]  ;;  %v352_v1 = vld [vmem:[%s533_s3 + $0x38] sm:$0xff]  ;;  %vm79_vm0 = vcmask 261120   ;;  %vm262_vm1 = vcmask 15360  }
   0xc   :  { %89 = vmatpush.bf16.msra.mxu0 %v344_v0  ;;  %v343_v2 = vld [vmem:[#allocation4] sm:$0xff]  ;;  %v57_v3 = vld [vmem:[#allocation2] sm:$0xff]  ;;  %166 = vmatpush.bf16.msra.mxu1 %v352_v1  ;;  %v351_v4 = vld [vmem:[%s533_s3 + $0x30] sm:$0xff] }
   0xd   :  { %v58_v5 = vpack.c.bf16 %v57_v3, %v57_v3  ;;  %v350_v6 = vld [vmem:[%s533_s3 + $0x28] sm:$0xff]  ;;  %v349_v7 = vld [vmem:[%s533_s3 + $0x20] sm:$0xff]  ;;  %v348_v8 = vld [vmem:[%s533_s3 + $0x18] sm:$0xff] }
   0xe   :  { %v347_v9 = vld [vmem:[%s533_s3 + $0x10] sm:$0xff]  ;;  %v346_v10 = vld [vmem:[%s533_s3 + $0x8] sm:$0xff]  ;;  %v345_v11 = vld [vmem:[%s533_s3] sm:$0xff] }
   0xf   :  { %v360_v12 = vld [vmem:[%s535_s5 + $0x38] sm:$0xff]  ;;  %v359_v13 = vld [vmem:[%s535_s5 + $0x30] sm:$0xff]  ;;  %v358_v14 = vld [vmem:[%s535_s5 + $0x28] sm:$0xff] }
  0x10   :  { %90 = vmatpush.bf16.msra.mxu0 %v343_v2  ;;  %167 = vmatpush.bf16.msra.mxu1 %v351_v4  ;;  %v357_v15 = vld [vmem:[%s535_s5 + $0x20] sm:$0xff]  ;;  %v356_v16 = vld [vmem:[%s535_s5 + $0x18] sm:$0xff]  ;;  %v355_v17 = vld [vmem:[%s535_s5 + $0x10] sm:$0xff] }
  0x11   :  { %249 = vmatpush.bf16.msra.mxu2 %v360_v12  ;;  %v365_v18 = vld [vmem:[%s532_s2] ss:$0 sm:$0xff]  ;;  %v354_v24 = vld [vmem:[%s535_s5 + $0x8] sm:$0xff] }
  0x12   :  { %v353_v25 = vld [vmem:[%s535_s5] sm:$0xff] }
  0x13   :  { %278 = vmatmul.msk.bf16.vlgmr.msra.gmra.mxu0 %vm79_vm0, %v58_v5  ;;  %v366_v26 = vld [vmem:[%s534_s4] ss:$0 sm:$0xff] }
  0x14   :  { %168 = vmatpush.bf16.msra.mxu1 %v350_v6  ;;  %v367_v32 = vld [vmem:[%s536_s6] ss:$0 sm:$0xff] }
  0x15   :  { %250 = vmatpush.bf16.msra.mxu2 %v359_v13 }
  0x18   :  { %169 = vmatpush.bf16.msra.mxu1 %v349_v7 }
  0x19   :  { %251 = vmatpush.bf16.msra.mxu2 %v358_v14 }
  0x1c   :  { %170 = vmatpush.bf16.msra.mxu1 %v348_v8 }
  0x1d   :  { %252 = vmatpush.bf16.msra.mxu2 %v357_v15 }
  0x20   :  { %171 = vmatpush.bf16.msra.mxu1 %v347_v9 }
  0x21   :  { %253 = vmatpush.bf16.msra.mxu2 %v356_v16 }
  0x24   :  { %172 = vmatpush.bf16.msra.mxu1 %v346_v10 }
  0x25   :  { %254 = vmatpush.bf16.msra.mxu2 %v355_v17 }
  0x28   :  { %173 = vmatpush.bf16.msra.mxu1 %v345_v11 }
  0x29   :  { %255 = vmatpush.bf16.msra.mxu2 %v354_v24 }
  0x2d   :  { %256 = vmatpush.bf16.msra.mxu2 %v353_v25 }
  0x90   :  { %v92_v19 = vpop.f32.mrf.mxu0 }
  0x91   :  { %v93_v20 = vadd.f32 %v365_v18, %v92_v19 }
  0x93   :  { %v96_v21 = vmax.f32 %v93_v20, 0.0 }
  0x95   :  { %v97_v22 = vpack.c.bf16 %v96_v21, %v96_v21 }
  0x97   :  { %174 = vmatmul.bf16.vlgmr.msra.gmra.mxu1 %v97_v22 }
  0x98   :  { %v94_v23 = vpop.f32.mrf.mxu0 }
 0x114   :  { %v175_v27 = vpop.f32.mrf.mxu1 }
 0x115   :  { %v176_v28 = vadd.f32 %v366_v26, %v175_v27 }
 0x117   :  { %v179_v29 = vmax.f32 %v176_v28, 0.0 }
 0x119   :  { %v180_v30 = vpack.c.bf16 %v179_v29, %v179_v29 }
 0x11b   :  { %257 = vmatmul.bf16.vlgmr.msra.gmra.mxu2 %v180_v30 }
 0x11c   :  { %v177_v31 = vpop.f32.mrf.mxu1 }
 0x19e   :  { %v258_v33 = vpop.f32.mrf.mxu2 }
 0x19f   :  { %v259_v34 = vadd.f32 %v367_v32, %v258_v33 }
 0x1a1   :  { %263 = vst.msk [vmem:[%s537_s7] sm:$0xff] %vm262_vm1, %v259_v34 }
 0x1a6   :  { %v260_v35 = vpop.f32.mrf.mxu2 }
 0x1a7   :  { %268 = vsyncpa [#allocation3], 1 }
 0x1a8   :  { %269 = vsyncpa [#allocation5], 1 }

</bundles_post_ra>
